<compile_context>
chip_gen: v7x
topology: tpu7x:2x2x1
jax: 0.10.0
libtpu: 0.0.40
codegen_flags: <defaults>
</compile_context>

<pallas_src>
import functools

import jax
import jax.numpy as jnp
from jax.experimental import pallas as pl
from jax.experimental.pallas import tpu as pltpu


def _round_up(x, m):
    return ((x + m - 1) // m) * m


def mlp_kernel(xt_ref, w1t_ref, b1_ref, w2t_ref, b2_ref, w3t_ref, b3_ref, o_ref, *, sub):
    # xt_ref: [20, TB] f32 (batch on lanes); weights bf16 resident; biases f32
    # column vectors; o_ref: [1, TB] f32 (lane-dense).
    tb = xt_ref.shape[1]
    n_sub = tb // sub  # static

    # Tiny resident operands: load once, reuse across sub-blocks.
    w1t = w1t_ref[...]                       # [64, 20] bf16
    w2t = w2t_ref[...]                       # [64, 64] bf16
    w3t = w3t_ref[...]                       # [1, 64]  bf16
    b1 = b1_ref[...]                         # [64, 1]  f32
    b2 = b2_ref[...]                         # [64, 1]  f32
    b3 = b3_ref[...]                         # [1, 1]   f32

    # Static (trace-time) sub-block loop: all slices are static multiples of
    # 128 lanes, so each sub-block's [64, sub] intermediates stay in vregs and
    # the o_ref store is an unmasked lane-dense row slice.
    for s in range(n_sub):
        lo = s * sub
        xs = xt_ref[:, lo:lo + sub].astype(jnp.bfloat16)                    # [20, sub]

        # Layer 1: Linear(20, 64) + ReLU  (bf16 MXU, f32 accumulate/epilogue)
        h1 = jnp.dot(w1t, xs, preferred_element_type=jnp.float32) + b1      # [64, sub]
        h1 = jnp.maximum(h1, 0.0).astype(jnp.bfloat16)

        # Layer 2: Linear(64, 64) + ReLU
        h2 = jnp.dot(w2t, h1, preferred_element_type=jnp.float32) + b2      # [64, sub]
        h2 = jnp.maximum(h2, 0.0).astype(jnp.bfloat16)

        # Layer 3: Linear(64, 1) + Sigmoid, already batch-on-lanes -> [1, sub]
        h3 = jnp.dot(w3t, h2, preferred_element_type=jnp.float32) + b3      # [1, sub]
        o_ref[:, lo:lo + sub] = jax.nn.sigmoid(h3).astype(o_ref.dtype)


def mlp_forward(x, params, *, block_b=2048, sub_b=512, vmem_limit_bytes=32 * 1024 * 1024):
    """Fused MLP forward. x: [B, 20] f32 -> [B, 1] f32."""
    w1, b1, w2, b2, w3, b3 = params
    B, F = x.shape
    assert F == 20

    # --- batch tile selection ------------------------------------------------
    # Always a multiple of 128 (lane-dense output blocks even for odd block_b);
    # cap so there are >= 2 grid steps when B > 256 (v7x megacore split).
    tb = min(block_b, _round_up(max(B, 1), 128))
    tb = _round_up(tb, 128)
    if B > 256:
        tb = min(tb, _round_up(pl.cdiv(B, 2), 128))
    tb = max(tb, 128)

    # Inner sub-block size: largest power-of-two <= sub_b that divides tb
    # (tb is a multiple of 128, so this terminates at >= 128).
    sub = max(128, sub_b)
    while tb % sub != 0:
        sub //= 2
    sub = max(sub, 128)

    num_tiles = pl.cdiv(B, tb)
    b_padded = num_tiles * tb

    # --- operand prep (one pass over x; weights are tiny) ---------------------
    # Batch-on-lanes layout: transpose x once in the wrapper. The ragged-tail
    # pad fuses with the transpose in XLA (single HBM pass over x).
    xt = x.T                                            # [20, B]
    if b_padded != B:
        xt = jnp.pad(xt, ((0, 0), (0, b_padded - B)))   # [20, B_padded]

    w1t = w1.T.astype(jnp.bfloat16)                     # [64, 20]
    w2t = w2.T.astype(jnp.bfloat16)                     # [64, 64]
    w3t = w3.T.astype(jnp.bfloat16)                     # [1, 64]
    b1c = b1.reshape(64, 1).astype(jnp.float32)         # [64, 1] (lane broadcast)
    b2c = b2.reshape(64, 1).astype(jnp.float32)         # [64, 1]
    b3c = b3.reshape(1, 1).astype(jnp.float32)          # [1, 1]

    param_bytes = sum(p.size * p.dtype.itemsize for p in (w1t, b1c, w2t, b2c, w3t, b3c))
    cost = pl.CostEstimate(
        flops=2 * b_padded * (20 * 64 + 64 * 64 + 64),
        transcendentals=b_padded,  # sigmoid
        bytes_accessed=b_padded * 20 * x.dtype.itemsize + b_padded * 4 + param_bytes,
    )

    kernel = functools.partial(mlp_kernel, sub=sub)

    out = pl.pallas_call(
        kernel,
        out_shape=jax.ShapeDtypeStruct((1, b_padded), jnp.float32),
        grid=(num_tiles,),
        in_specs=[
            pl.BlockSpec((20, tb), lambda i: (0, i)),   # x^T tile (pipelined)
            pl.BlockSpec((64, 20), lambda i: (0, 0)),   # W1^T (resident)
            pl.BlockSpec((64, 1), lambda i: (0, 0)),    # b1
            pl.BlockSpec((64, 64), lambda i: (0, 0)),   # W2^T
            pl.BlockSpec((64, 1), lambda i: (0, 0)),    # b2
            pl.BlockSpec((1, 64), lambda i: (0, 0)),    # W3^T
            pl.BlockSpec((1, 1), lambda i: (0, 0)),     # b3
        ],
        out_specs=pl.BlockSpec((1, tb), lambda i: (0, i)),  # lane-dense row
        compiler_params=pltpu.CompilerParams(
            dimension_semantics=("parallel",),
            vmem_limit_bytes=vmem_limit_bytes,
        ),
        cost_estimate=cost,
    )(xt, w1t, b1c, w2t, b2c, w3t, b3c)

    # (1, B_padded) -> (B, 1): cheap layout plumbing outside the kernel.
    return out.reshape(b_padded)[:B].reshape(B, 1)


def init_params(key):
    """Deterministic init mimicking nn.Linear's uniform(-1/sqrt(fan_in), +)."""

    def linear_init(k, fan_in, fan_out):
        kw, kb = jax.random.split(k)
        bound = 1.0 / jnp.sqrt(fan_in)
        # Stored as [in, out] so the reference computes x @ W + b.
        w = jax.random.uniform(kw, (fan_in, fan_out), jnp.float32, -bound, bound)
        b = jax.random.uniform(kb, (1, fan_out), jnp.float32, -bound, bound)
        return w, b

    k1, k2, k3 = jax.random.split(key, 3)
    w1, b1 = linear_init(k1, 20, 64)
    w2, b2 = linear_init(k2, 64, 64)
    w3, b3 = linear_init(k3, 64, 1)
    return (w1, b1, w2, b2, w3, b3)


def mlp_reference(x, params):
    w1, b1, w2, b2, w3, b3 = params
    h = jax.nn.relu(x @ w1 + b1)
    h = jax.nn.relu(h @ w2 + b2)
    return jax.nn.sigmoid(h @ w3 + b3)


if __name__ == "__main__":
    key = jax.random.PRNGKey(0)
    k_params, k_x1, k_x2, k_x3 = jax.random.split(key, 4)

    params = init_params(k_params)

    # Case 1: tiny batch (pads to one 128-column tile, single grid step).
    x_small = jax.random.normal(k_x1, (8, 20), jnp.float32)
    out_small = jax.block_until_ready(mlp_forward(x_small, params))
    ref_small = mlp_reference(x_small, params)
    assert out_small.shape == (8, 1)
    # bf16 matmul operands -> compare against f32 reference with bf16 tolerance.
    assert jnp.allclose(out_small, ref_small, atol=2e-2, rtol=2e-2)

    # Case 2: ragged batch; >=2-grid-step rule kicks in (tb=256 -> 2 tiles,
    # 212 padded columns sliced off).
    x_mid = jax.random.normal(k_x2, (300, 20), jnp.float32)
    out_mid = jax.block_until_ready(mlp_forward(x_mid, params))
    ref_mid = mlp_reference(x_mid, params)
    assert out_mid.shape == (300, 1)
    assert jnp.allclose(out_mid, ref_mid, atol=2e-2, rtol=2e-2)

    # Case 3: multi-sub-block tiles (tb=768, sub=256 -> 3 inner sub-blocks),
    # 2 grid steps, ragged tail.
    x_big = jax.random.normal(k_x3, (1500, 20), jnp.float32)
    out_big = jax.block_until_ready(mlp_forward(x_big, params))
    ref_big = mlp_reference(x_big, params)
    assert out_big.shape == (1500, 1)
    assert jnp.allclose(out_big, ref_big, atol=2e-2, rtol=2e-2)

    print("KERNEL_OK")
</pallas_src>

<mosaic_0001>
module attributes {stable_mosaic.version = 11 : i64} {
  func.func @mlp_kernel(%arg0: i32, %arg1: memref<20x128xf32, #tpu.memory_space<vmem>>, %arg2: memref<64x20xbf16, #tpu.memory_space<vmem>>, %arg3: memref<64x1xf32, #tpu.memory_space<vmem>>, %arg4: memref<64x64xbf16, #tpu.memory_space<vmem>>, %arg5: memref<64x1xf32, #tpu.memory_space<vmem>>, %arg6: memref<1x64xbf16, #tpu.memory_space<vmem>>, %arg7: memref<1x1xf32, #tpu.memory_space<vmem>>, %arg8: memref<1x128xf32, #tpu.memory_space<vmem>>) attributes {dimension_semantics = [#tpu.dimension_semantics<parallel>], iteration_bounds = array<i64: 1>, scalar_prefetch = 0 : i64, scratch_operands = 0 : i64, tpu.core_type = #tpu.core_type<tc>, window_params = [{transform_indices = @transform_0, window_bounds = array<i64: 20, 128>}, {pipeline_mode = #tpu.pipeline_mode<synchronous>, transform_indices = @transform_1, window_bounds = array<i64: 64, 20>}, {pipeline_mode = #tpu.pipeline_mode<synchronous>, transform_indices = @transform_2, window_bounds = array<i64: 64, 1>}, {pipeline_mode = #tpu.pipeline_mode<synchronous>, transform_indices = @transform_3, window_bounds = array<i64: 64, 64>}, {pipeline_mode = #tpu.pipeline_mode<synchronous>, transform_indices = @transform_4, window_bounds = array<i64: 64, 1>}, {pipeline_mode = #tpu.pipeline_mode<synchronous>, transform_indices = @transform_5, window_bounds = array<i64: 1, 64>}, {pipeline_mode = #tpu.pipeline_mode<synchronous>, transform_indices = @transform_6, window_bounds = array<i64: 1, 1>}, {transform_indices = @transform_7, window_bounds = array<i64: 1, 128>}]} {
    %c0 = arith.constant 0 : index
    %c0_0 = arith.constant 0 : index
    %0 = vector.load %arg2[%c0, %c0_0] : memref<64x20xbf16, #tpu.memory_space<vmem>>, vector<64x20xbf16>
    %c0_1 = arith.constant 0 : index
    %c0_2 = arith.constant 0 : index
    %1 = vector.load %arg4[%c0_1, %c0_2] : memref<64x64xbf16, #tpu.memory_space<vmem>>, vector<64x64xbf16>
    %c0_3 = arith.constant 0 : index
    %c0_4 = arith.constant 0 : index
    %2 = vector.load %arg6[%c0_3, %c0_4] : memref<1x64xbf16, #tpu.memory_space<vmem>>, vector<1x64xbf16>
    %c0_5 = arith.constant 0 : index
    %c0_6 = arith.constant 0 : index
    %3 = vector.load %arg3[%c0_5, %c0_6] : memref<64x1xf32, #tpu.memory_space<vmem>>, vector<64x1xf32>
    %c0_7 = arith.constant 0 : index
    %c0_8 = arith.constant 0 : index
    %4 = vector.load %arg5[%c0_7, %c0_8] : memref<64x1xf32, #tpu.memory_space<vmem>>, vector<64x1xf32>
    %c0_9 = arith.constant 0 : index
    %c0_10 = arith.constant 0 : index
    %5 = vector.load %arg7[%c0_9, %c0_10] : memref<1x1xf32, #tpu.memory_space<vmem>>, vector<1x1xf32>
    %c0_11 = arith.constant 0 : index
    %c0_12 = arith.constant 0 : index
    %6 = vector.load %arg1[%c0_11, %c0_12] : memref<20x128xf32, #tpu.memory_space<vmem>>, vector<20x128xf32>
    %7 = arith.truncf %6 : vector<20x128xf32> to vector<20x128xbf16>
    %cst = arith.constant dense<0.000000e+00> : vector<64x128xf32>
    %8 = tpu.matmul %0, %7, %cst {dimension_numbers = #tpu.dot_dimension_numbers<[1], [0], [0], [1], [0, 0, 1, 1], [], []>} : vector<64x20xbf16>, vector<20x128xbf16>, vector<64x128xf32> -> vector<64x128xf32>
    %9 = vector.broadcast %3 : vector<64x1xf32> to vector<64x128xf32>
    %10 = arith.addf %8, %9 : vector<64x128xf32>
    %cst_13 = arith.constant 0.000000e+00 : f32
    %11 = vector.broadcast %cst_13 : f32 to vector<64x128xf32>
    %12 = arith.maximumf %10, %11 : vector<64x128xf32>
    %13 = arith.truncf %12 : vector<64x128xf32> to vector<64x128xbf16>
    %cst_14 = arith.constant dense<0.000000e+00> : vector<64x128xf32>
    %14 = tpu.matmul %1, %13, %cst_14 {dimension_numbers = #tpu.dot_dimension_numbers<[1], [0], [0], [1], [0, 0, 1, 1], [], []>} : vector<64x64xbf16>, vector<64x128xbf16>, vector<64x128xf32> -> vector<64x128xf32>
    %15 = vector.broadcast %4 : vector<64x1xf32> to vector<64x128xf32>
    %16 = arith.addf %14, %15 : vector<64x128xf32>
    %cst_15 = arith.constant 0.000000e+00 : f32
    %17 = vector.broadcast %cst_15 : f32 to vector<64x128xf32>
    %18 = arith.maximumf %16, %17 : vector<64x128xf32>
    %19 = arith.truncf %18 : vector<64x128xf32> to vector<64x128xbf16>
    %cst_16 = arith.constant dense<0.000000e+00> : vector<1x128xf32>
    %20 = tpu.matmul %2, %19, %cst_16 {dimension_numbers = #tpu.dot_dimension_numbers<[1], [0], [0], [1], [0, 0, 1, 1], [], []>} : vector<1x64xbf16>, vector<64x128xbf16>, vector<1x128xf32> -> vector<1x128xf32>
    %21 = vector.broadcast %5 : vector<1x1xf32> to vector<1x128xf32>
    %22 = arith.addf %20, %21 : vector<1x128xf32>
    %23 = arith.negf %22 : vector<1x128xf32>
    %24 = math.exp %23 : vector<1x128xf32>
    %cst_17 = arith.constant 1.000000e+00 : f32
    %25 = vector.broadcast %cst_17 : f32 to vector<1x128xf32>
    %26 = arith.addf %25, %24 : vector<1x128xf32>
    %27 = arith.divf %25, %26 : vector<1x128xf32>
    %c0_18 = arith.constant 0 : index
    %c0_19 = arith.constant 0 : index
    %28 = vector.load %arg8[%c0_18, %c0_19] : memref<1x128xf32, #tpu.memory_space<vmem>>, vector<1x128xf32>
    tpu.vector_store %arg8[%c0_18, %c0_19], %27 {strides = array<i32>} : memref<1x128xf32, #tpu.memory_space<vmem>>, vector<1x128xf32>,
    return
  }
  func.func @transform_0(%arg0: i32) -> (i32, i32) {
    %c0_i32 = arith.constant 0 : i32
    %c0_i32_0 = arith.constant 0 : i32
    return %c0_i32, %arg0 : i32, i32
  }
  func.func @transform_1(%arg0: i32) -> (i32, i32) {
    %c0_i32 = arith.constant 0 : i32
    %c0_i32_0 = arith.constant 0 : i32
    %c0_i32_1 = arith.constant 0 : i32
    return %c0_i32, %c0_i32_0 : i32, i32
  }
  func.func @transform_2(%arg0: i32) -> (i32, i32) {
    %c0_i32 = arith.constant 0 : i32
    %c0_i32_0 = arith.constant 0 : i32
    %c0_i32_1 = arith.constant 0 : i32
    return %c0_i32, %c0_i32_0 : i32, i32
  }
  func.func @transform_3(%arg0: i32) -> (i32, i32) {
    %c0_i32 = arith.constant 0 : i32
    %c0_i32_0 = arith.constant 0 : i32
    %c0_i32_1 = arith.constant 0 : i32
    return %c0_i32, %c0_i32_0 : i32, i32
  }
  func.func @transform_4(%arg0: i32) -> (i32, i32) {
    %c0_i32 = arith.constant 0 : i32
    %c0_i32_0 = arith.constant 0 : i32
    %c0_i32_1 = arith.constant 0 : i32
    return %c0_i32, %c0_i32_0 : i32, i32
  }
  func.func @transform_5(%arg0: i32) -> (i32, i32) {
    %c0_i32 = arith.constant 0 : i32
    %c0_i32_0 = arith.constant 0 : i32
    %c0_i32_1 = arith.constant 0 : i32
    return %c0_i32, %c0_i32_0 : i32, i32
  }
  func.func @transform_6(%arg0: i32) -> (i32, i32) {
    %c0_i32 = arith.constant 0 : i32
    %c0_i32_0 = arith.constant 0 : i32
    %c0_i32_1 = arith.constant 0 : i32
    return %c0_i32, %c0_i32_0 : i32, i32
  }
  func.func @transform_7(%arg0: i32) -> (i32, i32) {
    %c0_i32 = arith.constant 0 : i32
    %c0_i32_0 = arith.constant 0 : i32
    return %c0_i32, %arg0 : i32, i32
  }
}

</mosaic_0001>

<bundles_post_ra>
// kernel: tpu_custom_call.1
= control target key start
LH: loop header
LB: loop body
LE: loop exit
PB: predicated region body
PF: predicated region fallthrough
CT: control target
= control target key end

     0   :  { %s718_s0 = inlined_call_operand.vmem [shape: f32[20,128], index: 0, kind: input, shape index: {}]   ;;  %s719_s1 = inlined_call_operand.vmem [shape: bf16[64,20], index: 1, kind: input, shape index: {}]   ;;  %s720_s2 = inlined_call_operand.vmem [shape: f32[64,1], index: 2, kind: input, shape index: {}]   ;;  %s721_s3 = inlined_call_operand.vmem [shape: bf16[64,64], index: 3, kind: input, shape index: {}]   ;;  %s722_s4 = inlined_call_operand.vmem [shape: f32[64,1], index: 4, kind: input, shape index: {}]   ;;  %s723_s5 = inlined_call_operand.vmem [shape: bf16[1,64], index: 5, kind: input, shape index: {}]   ;;  %s724_s6 = inlined_call_operand.<no memory space> [shape: f32[1,1], index: 6, kind: input, shape index: {}]   ;;  %s725_s7 = inlined_call_operand.hbm [shape: f32[1,128], index: 7, kind: output, shape index: {}]  }
   0x1   :  { %v12_v0 = vstv %s724_s6 }
   0x2   :  { %13 = vst [vmem:[#allocation2] sm:$0x1] %v12_v0 }
   0x3   :  { %v64_v1 = vld [vmem:[%s718_s0] sm:$0xff]  ;;  %v65_v2 = vld [vmem:[%s718_s0 + $0x8] sm:$0xff]  ;;  %v66_v3 = vld [vmem:[%s718_s0 + $0x10] sm:$0xf]  ;;  %vm129_vm0 = vcmask 162816   ;;  %vm142_vm1 = vcmask 1041408  }
   0x4   :  { %v67_v4 = vpack.c.bf16 %v65_v2, %v64_v1  ;;  %v68_v5 = vpack.c.bf16 %v66_v3, %v66_v3  ;;  %v530_v6 = vld [vmem:[%s719_s1] sm:$0xff]   ;;  %v566_v7 = vmov 0   ;;  %v49_v10 = vld [vmem:[%s720_s2 + $0x10] sm:$0xff]  ;;  %v531_v11 = vld [vmem:[%s719_s1 + $0x8] sm:$0xff]  }
   0x5   :  { %528 = vset.pattern.permute.xlu0 %v566_v7  ;;  %529 = vset.pattern.permute.xlu1 %v566_v7  ;;  %v47_v9 = vld [vmem:[%s720_s2] sm:$0xff]  ;;  %v48_v12 = vld [vmem:[%s720_s2 + $0x8] sm:$0xff]  ;;  %v50_v13 = vld [vmem:[%s720_s2 + $0x18] sm:$0xff] }
   0x6   :  { %483 = vmatprep.subr.bf16.mxu0 %v67_v4  ;;  %487 = vmatprep.mubr.msk.bf16.mxu0 %vm129_vm0, %v530_v6  ;;  %v144_v8 = vsel %vm142_vm1, %v68_v5, 0  ;;  %v532_v14 = vld [vmem:[%s719_s1 + $0x10] sm:$0xff]   ;;  %v51_v15 = vld [vmem:[%s720_s2 + $0x20] sm:$0xff]  ;;  %v52_v16 = vld [vmem:[%s720_s2 + $0x28] sm:$0xff] }
   0x7   :  { %484 = vmatpush3.bf16.msra.mxu0 %v67_v4  ;;  %71 = vperm.xlu0 %528, %v47_v9  }
   0x8   :  { %523 = vmatprep.subr.msk.bf16.mxu0 %vm142_vm1, %v68_v5  ;;  %81 = vperm.xlu1 %529, %v49_v10  }
   0xb   :  { %486 = vmatpush3.bf16.msra.mxu0 %v144_v8  ;;  %76 = vperm.xlu0 %528, %v48_v12  }
   0xc   :  { %86 = vperm.xlu1 %529, %v50_v13  }
   0xe   :  { %488 = vmatmul.mubr.msk.bf16.vlgmr.msra.gmra.mrb[0].mxu0 %vm129_vm0, %v531_v11 }
   0xf   :  { %491 = vmatprep.mubr.msk.bf16.mxu0 %vm129_vm0, %v532_v14 }
  0x10   :  { %14 = vsyncpa [#allocation4], 0  ;;  %91 = vperm.xlu0 %528, %v51_v15   ;;  %96 = vperm.xlu1 %529, %v52_v16   ;;  %v533_v17 = vld [vmem:[%s719_s1 + $0x18] sm:$0xff]   ;;  %v53_v18 = vld [vmem:[%s720_s2 + $0x30] sm:$0xff]  ;;  %vm283_vm2 = vcmask 523264   ;;  %v567_v5 = vmov 0.0  }
  0x11   :  { %v54_v19 = vld [vmem:[%s720_s2 + $0x38] sm:$0xff]  ;;  %v55_v20 = vld [vmem:[%s722_s4] sm:$0xff]  ;;  %v56_v21 = vld [vmem:[%s722_s4 + $0x8] sm:$0xff]  ;;  %511 = vmatprep.subr.bf16.mxu0 %v567_v5  ;;  %vm568_vm3 = vmmov 0   ;;  %s569_s28 = smov [#allocation3]  }
  0x12   :  { %v57_v22 = vld [vmem:[%s722_s4 + $0x10] sm:$0xff]  ;;  %v58_v23 = vld [vmem:[%s722_s4 + $0x18] sm:$0xff]  ;;  %v59_v24 = vld [vmem:[%s722_s4 + $0x20] sm:$0xff]  ;;  %s438_s29 = sshll.u32 %s569_s28, 4  ;;  %s439_s29 = int_to_ptr.vmem [resolvable:$true] %s438_s29 }
  0x13   :  { %v60_v25 = vld [vmem:[%s722_s4 + $0x28] sm:$0xff]  ;;  %v61_v26 = vld [vmem:[%s722_s4 + $0x30] sm:$0xff]  ;;  %v62_v27 = vld [vmem:[%s722_s4 + $0x38] sm:$0xff]  ;;  %s546_s30 = scalar_lea.vmem %s439_s29, 32  ;;  %p547_p1 = scmp.lt.s32.totalorder %s439_s29, %s439_s29 }
  0x14   :  { %101 = vperm.xlu0 %528, %v53_v18   ;;  %106 = vperm.xlu1 %529, %v54_v19   ;;  %v63_v28 = vld [vmem:[#allocation2] sm:$0x1]  ;;  %v535_v2 = vld [vmem:[%s721_s3 + $0x8] sm:$0xff]   ;;  %v536_v3 = vld [vmem:[%s721_s3 + $0x10] sm:$0xff]  }
  0x15   :  { %v534_v29 = vld [vmem:[%s721_s3] sm:$0xff]   ;;  %v537_v4 = vld [vmem:[%s721_s3 + $0x18] sm:$0xff]  }
  0x16   :  { %492 = vmatmul.mubr.msk.bf16.gmra.mrb[4].mxu0 %vm129_vm0, %v533_v17  ;;  %503 = vmatprep.mubr.msk.bf16.mxu1 %vm283_vm2, %v534_v29 }
  0x17   :  { %519 = vmatprep.mubr.msk.bf16.mxu0 %vm568_vm3, %v567_v5 }
  0x18   :  { %225 = vperm.xlu0 %528, %v55_v20   ;;  %230 = vperm.xlu1 %529, %v56_v21  }
  0x1c   :  { %235 = vperm.xlu0 %528, %v57_v22   ;;  %240 = vperm.xlu1 %529, %v58_v23  }
  0x20   :  { %245 = vperm.xlu0 %528, %v59_v24   ;;  %250 = vperm.xlu1 %529, %v60_v25  }
  0x24   :  { %255 = vperm.xlu0 %528, %v61_v26   ;;  %260 = vperm.xlu1 %529, %v62_v27  }
  0x28   :  { %375 = vperm.xlu0 %528, %v63_v28  }
  0x86   :  { %v72_v30 = vpop.permute.xlu0 %71 }
  0x87   :  { %v82_v31 = vpop.permute.xlu1 %81 }
  0x8a   :  { %v77_v32 = vpop.permute.xlu0 %76 }
  0x8b   :  { %v87_v33 = vpop.permute.xlu1 %86 }
  0x8f   :  { %v92_v37 = vpop.permute.xlu0 %91  ;;  %v97_v42 = vpop.permute.xlu1 %96 }
  0x93   :  { %v102_v49 = vpop.permute.xlu0 %101  ;;  %v107_v54 = vpop.permute.xlu1 %106 }
  0x97   :  { %v226_v6 = vpop.permute.xlu0 %225  ;;  %v231_v7 = vpop.permute.xlu1 %230 }
  0x9b   :  { %v236_v8 = vpop.permute.xlu0 %235  ;;  %v241_v9 = vpop.permute.xlu1 %240 }
  0x9f   :  { %v246_v13 = vpop.permute.xlu0 %245  ;;  %v251_v18 = vpop.permute.xlu1 %250 }
  0xa3   :  { %v256_v25 = vpop.permute.xlu0 %255 }
  0xe1   :  { %v489_v34 = vpop.f32.mrb[0].mxu0 }
  0xe2   :  { %v189_v35 = vadd.f32 %v489_v34, %v82_v31  ;;  %v180_v36 = vpop.f32.mrb[1].mxu0 }
  0xe3   :  { %v181_v38 = vadd.f32 %v180_v36, %v72_v30  ;;  %v490_v39 = vpop.f32.mrb[2].mxu0  ;;  %v261_v30 = vpop.permute.xlu1 %260 }
  0xe4   :  { %v192_v40 = vadd.f32 %v490_v39, %v87_v33  ;;  %v183_v41 = vpop.f32.mrb[3].mxu0  ;;  %v213_v44 = vmax.f32 %v189_v35, 0.0 }
  0xe5   :  { %v184_v43 = vadd.f32 %v183_v41, %v77_v32  ;;  %v211_v46 = vmax.f32 %v181_v38, 0.0 }
  0xe6   :  { %v214_v45 = vmax.f32 %v192_v40, 0.0 }
  0xe7   :  { %v212_v47 = vmax.f32 %v184_v43, 0.0  ;;  %v378_v43 = vlaneseq }
  0xe8   :  { %v220_v48 = vpack.c.bf16 %v214_v45, %v213_v44 }
  0xe9   :  { %v493_v50 = vpop.f32.mrb[4].mxu0  ;;  %v219_v51 = vpack.c.bf16 %v212_v47, %v211_v46  ;;  %v379_v44 = vshrl.u32 %v378_v43, 7  ;;  %v376_v46 = vpop.permute.xlu0 %375 }
  0xea   :  { %v205_v52 = vadd.f32 %v493_v50, %v102_v49  ;;  %v196_v53 = vpop.f32.mrb[5].mxu0 }
  0xeb   :  { %v197_v55 = vadd.f32 %v196_v53, %v92_v37  ;;  %v494_v56 = vpop.f32.mrb[6].mxu0  ;;  %495 = vmatprep.subr.bf16.mxu1 %v219_v51  ;;  %v380_v45 = vsub.s32 0, %v379_v44 }
  0xec   :  { %v208_v57 = vadd.f32 %v494_v56, %v107_v54  ;;  %v199_v58 = vpop.f32.mrb[7].mxu0  ;;  %496 = vmatpush3.bf16.msra.mxu1 %v219_v51  ;;  %v217_v60 = vmax.f32 %v205_v52, 0.0 }
  0xed   :  { %v200_v59 = vadd.f32 %v199_v58, %v97_v42  ;;  %497 = vmatprep.subr.bf16.mxu1 %v220_v48  ;;  %v215_v62 = vmax.f32 %v197_v55, 0.0  ;;  %v46_v42 = vld [vmem:[%s723_s5] sm:$0x1]  ;;  %v381_v47 = vrot.slane %v376_v46, %v380_v45  ;;  %s542_s5 = scalar_lea.vmem %s439_s29, 16 }
  0xee   :  { %v218_v61 = vmax.f32 %v208_v57, 0.0  ;;  %p543_p0 = scmp.ne.s32.totalorder %s439_s29, %s542_s5  ;;  %p548_p2 = scmp.lt.s32.totalorder %s546_s30, %s542_s5 }
  0xef   :  { %v216_v63 = vmax.f32 %v200_v59, 0.0 }
  0xf0   :  { %v222_v0 = vpack.c.bf16 %v218_v61, %v217_v60  ;;  %498 = vmatpush3.bf16.msra.mxu1 %v220_v48  ;;  %p549_p3 = por %p548_p2, %p547_p1 }
  0xf1   :  { %v221_v1 = vpack.c.bf16 %v216_v63, %v215_v62 }
  0xf2   :  { %p550_p4 = pnand %p549_p3, %p543_p0 }
  0xf3   :  { %499 = vmatprep.subr.bf16.mxu1 %v221_v1 }
  0xf4   :  { %500 = vmatpush3.bf16.msra.mxu1 %v221_v1 }
  0xf5   :  { %501 = vmatprep.subr.bf16.mxu1 %v222_v0 }
  0xf8   :  { %502 = vmatpush3.bf16.msra.mxu1 %v222_v0 }
  0xfb   :  { %504 = vmatmul.mubr.msk.bf16.vlgmr.msra.gmra.mrb[0].mxu1 %vm283_vm2, %v535_v2 }
  0xfc   :  { %507 = vmatprep.mubr.msk.bf16.mxu1 %vm283_vm2, %v536_v3 }
 0x103   :  { %508 = vmatmul.mubr.msk.bf16.gmra.mrb[4].mxu1 %vm283_vm2, %v537_v4 }
 0x1ce   :  { %v505_v10 = vpop.f32.mrb[0].mxu1 }
 0x1cf   :  { %v339_v11 = vadd.f32 %v505_v10, %v236_v8  ;;  %v330_v12 = vpop.f32.mrb[1].mxu1 }
 0x1d0   :  { %v331_v14 = vadd.f32 %v330_v12, %v226_v6  ;;  %v506_v15 = vpop.f32.mrb[2].mxu1 }
 0x1d1   :  { %v342_v16 = vadd.f32 %v506_v15, %v241_v9  ;;  %v333_v17 = vpop.f32.mrb[3].mxu1  ;;  %v363_v20 = vmax.f32 %v339_v11, 0.0 }
 0x1d2   :  { %v334_v19 = vadd.f32 %v333_v17, %v231_v7  ;;  %v361_v22 = vmax.f32 %v331_v14, 0.0 }
 0x1d3   :  { %v364_v21 = vmax.f32 %v342_v16, 0.0 }
 0x1d4   :  { %v362_v23 = vmax.f32 %v334_v19, 0.0 }
 0x1d5   :  { %v370_v24 = vpack.c.bf16 %v364_v21, %v363_v20 }
 0x1d6   :  { %v369_v26 = vpack.c.bf16 %v362_v23, %v361_v22  ;;  %v509_v27 = vpop.f32.mrb[4].mxu1 }
 0x1d7   :  { %v355_v28 = vadd.f32 %v509_v27, %v256_v25  ;;  %v346_v29 = vpop.f32.mrb[5].mxu1 }
 0x1d8   :  { %v347_v31 = vadd.f32 %v346_v29, %v246_v13  ;;  %v510_v32 = vpop.f32.mrb[6].mxu1  ;;  %512 = vmatpush3.bf16.msra.mxu0 %v369_v26 }
 0x1d9   :  { %v358_v33 = vadd.f32 %v510_v32, %v261_v30  ;;  %v349_v34 = vpop.f32.mrb[7].mxu1  ;;  %513 = vmatprep.subr.bf16.mxu0 %v567_v5  ;;  %v367_v36 = vmax.f32 %v355_v28, 0.0 }
 0x1da   :  { %v350_v35 = vadd.f32 %v349_v34, %v251_v18  ;;  %v365_v38 = vmax.f32 %v347_v31, 0.0 }
 0x1db   :  { %v368_v37 = vmax.f32 %v358_v33, 0.0 }
 0x1dc   :  { %v366_v39 = vmax.f32 %v350_v35, 0.0  ;;  %514 = vmatpush3.bf16.msra.mxu0 %v370_v24 }
 0x1dd   :  { %v372_v40 = vpack.c.bf16 %v368_v37, %v367_v36  ;;  %515 = vmatprep.subr.bf16.mxu0 %v567_v5 }
 0x1de   :  { %v371_v41 = vpack.c.bf16 %v366_v39, %v365_v38 }
 0x1e0   :  { %516 = vmatpush3.bf16.msra.mxu0 %v371_v41 }
 0x1e1   :  { %517 = vmatprep.subr.bf16.mxu0 %v567_v5 }
 0x1e4   :  { %518 = vmatpush3.bf16.msra.mxu0 %v372_v40 }
 0x1e7   :  { %520 = vmatmul.mubr.msk.bf16.vlgmr.msra.gmra.mrb[8].mxu0 %vm283_vm2, %v46_v42 }
 0x2ba   :  { %v419_v48 = vpop.f32.mrb[8].mxu0 }
 0x2bb   :  { %v420_v49 = vadd.f32 %v419_v48, %v381_v47  ;;  %v521_v50 = vpop.f32.mrb[9].mxu0 }
 0x2bc   :  { %v422_v51 = vpop.f32.mrb[10].mxu0 }
 0x2bd   :  { %v463_v52 = vmul.f32 -1.442695, %v420_v49  ;;  %v522_v53 = vpop.f32.mrb[11].mxu0 }
 0x2bf   :  { %538 = vpow2.f32 %v463_v52 }
 0x2c9   :  { %v539_v54 = vpop.eup %538 }
 0x2ca   :  { %v428_v55 = vadd.f32 1.0, %v539_v54 }
 0x2cc   :  { %540 = vrcp.f32 %v428_v55 }
 0x2d6   :  { %v541_v56 = vpop.eup %540 }
 0x2d7   :  { %431 = vst [vmem:[#allocation3] sm:$0x1] %v541_v56 }
 0x2d8   :  { %553 = shalt.err (!%p550_p4)
}
 0x2d9   :  { %s554_s10 = scalar_lea.hbm %s725_s7, 16 }
 0x2da   :  { %p555_p5 = scmp.ne.s32.totalorder %s725_s7, %s554_s10  ;;  %p558_p6 = scmp.lt.u32.totalorder %s554_s10, %s725_s7 }
 0x2dc   :  { %p560_p7 = pnand %p558_p6, %p555_p5 }
 0x2de   :  { %563 = shalt.err (!%p560_p7)
}
 0x2df   :  { %441 = dma.vmem_to_hbm [thread:$0]  %s439_s29, 16, %s725_s7, [#allocation4]  }
 0x2e0   :  { %564 = dma.done.wait [#allocation4], 16  }
 0x2e1   :  { %565 = vsyncadd [#allocation4], 4294967280 }
 0x2e2   :  { %445 = vsyncpa [#allocation4], 1 }

</bundles_post_ra>
